<compile_context>
chip_gen: v6e
topology: v6e:2x2x1
jax: 0.10.0
libtpu: 0.0.40
codegen_flags: <defaults>
</compile_context>

<pallas_src>
import jax
import jax.numpy as jnp
from jax import lax
from jax.experimental import pallas as pl
from jax.experimental.pallas import tpu as pltpu


def _mask_kernel(x_ref, w_ref, o_ref, pad_ref):
    # x_ref:   (C, H, W)     f32  VMEM   one image, NCHW (W on lanes)
    # w_ref:   (C*9,)        f32  SMEM   conv weights, index = c*9 + dh*3 + dw
    # o_ref:   (H, W)        f32  VMEM   sigmoid(conv) output
    # pad_ref: (H+2, W+2)    f32  VMEM   tiny zero-bordered shift scratch
    C, H, W = x_ref.shape

    # ---- main loop: channel reduction at the VALU floor --------------------
    # 9 independent partial accumulators (one per 3x3 tap); every channel is a
    # single aligned (H, W) load reused for all 9 scalar-weight MACs.
    def chan_body(c, accs):
        xc = x_ref[c]                       # aligned full-plane load
        base = c * 9
        return tuple(accs[k] + xc * w_ref[base + k] for k in range(9))

    init = tuple(jnp.zeros((H, W), jnp.float32) for _ in range(9))
    accs = lax.fori_loop(0, C, chan_body, init)

    # ---- epilogue: apply the 3x3 spatial shifts once per image -------------
    # Zero the small scratch each step (cheap: (H+2)*(W+2) elements, not C*...);
    # re-zeroing per step also keeps it correct if the grid is split across
    # TensorCores. Borders stay zero; interior is overwritten per tap.
    pad_ref[...] = jnp.zeros_like(pad_ref)
    out = jnp.zeros((H, W), jnp.float32)
    for dh in range(3):
        for dw in range(3):
            pad_ref[1:H + 1, 1:W + 1] = accs[dh * 3 + dw]
            out = out + pad_ref[dh:dh + H, dw:dw + W]

    o_ref[...] = jax.nn.sigmoid(out)


def _round_up(x, m):
    return (x + m - 1) // m * m


def get_mask_g(x_nchw, weight_oihw):
    """Forward pass of GET_MASK_G.

    x_nchw:      (N, ngf, H, W)  float32  (PyTorch NCHW convention)
    weight_oihw: (1, ngf, 3, 3)  float32  (PyTorch Conv2d weight, bias=False)
    returns:     (N, 1, H, W)    float32  sigmoid(conv3x3(x))
    """
    N, C, H, W = x_nchw.shape
    x = x_nchw.astype(jnp.float32)
    # (1, C, 3, 3) -> flat (C*9,) ordered [c, dh, dw]; lives in SMEM as scalars.
    w_flat = weight_oihw.astype(jnp.float32).reshape(-1)

    # VMEM budget from the actual lane/sublane-padded footprint, capped well
    # below the chip's physical VMEM (leave headroom for Mosaic scratch).
    lanes_w = _round_up(W, 128)
    lanes_w2 = _round_up(W + 2, 128)
    sub_h = _round_up(H, 8)
    sub_h2 = _round_up(H + 2, 8)
    need_bytes = 4 * (2 * C * sub_h * lanes_w      # double-buffered input block
                      + 2 * sub_h * lanes_w        # double-buffered output block
                      + sub_h2 * lanes_w2)         # shift scratch
    try:
        vmem_cap = int(pltpu.get_tpu_info().vmem_capacity_bytes)
    except Exception:
        vmem_cap = 128 * 1024 * 1024
    vmem_limit = int(min(max(2 * need_bytes, 16 * 1024 * 1024),
                         int(0.8 * vmem_cap)))

    out = pl.pallas_call(
        _mask_kernel,
        out_shape=jax.ShapeDtypeStruct((N, H, W), jnp.float32),
        grid=(N,),
        in_specs=[
            pl.BlockSpec((None, C, H, W), lambda b: (b, 0, 0, 0)),
            pl.BlockSpec(memory_space=pltpu.MemorySpace.SMEM),
        ],
        out_specs=pl.BlockSpec((None, H, W), lambda b: (b, 0, 0)),
        scratch_shapes=[pltpu.VMEM((H + 2, W + 2), jnp.float32)],
        compiler_params=pltpu.CompilerParams(
            dimension_semantics=("parallel",),
            vmem_limit_bytes=vmem_limit,
        ),
    )(x, w_flat)

    # match PyTorch output shape: (N, 1, H, W)
    return out[:, None, :, :]


def _reference(x_nchw, weight_oihw):
    # Pure-JAX reference: conv3x3 (pad=1, no bias) + sigmoid, NCHW in/out.
    y = lax.conv_general_dilated(
        x_nchw.astype(jnp.float32),
        weight_oihw.astype(jnp.float32),
        window_strides=(1, 1),
        padding=((1, 1), (1, 1)),
        dimension_numbers=("NCHW", "OIHW", "NCHW"),
    )
    return jax.nn.sigmoid(y)


if __name__ == "__main__":
    key = jax.random.PRNGKey(0)
    k_x, k_w = jax.random.split(key)

    N, ngf, H, W = 2, 4, 16, 16
    x = jax.random.normal(k_x, (N, ngf, H, W), dtype=jnp.float32)
    fan_in = ngf * 3 * 3
    weight = jax.random.normal(k_w, (1, ngf, 3, 3), dtype=jnp.float32)
    weight = weight * jnp.sqrt(2.0 / fan_in)

    out = jax.block_until_ready(get_mask_g(x, weight))
    ref = jax.block_until_ready(_reference(x, weight))

    assert out.shape == (N, 1, H, W), out.shape
    assert jnp.allclose(out, ref, atol=1e-5, rtol=1e-5), \
        float(jnp.max(jnp.abs(out - ref)))

    print("KERNEL_OK")
</pallas_src>

<mosaic_0001>
module attributes {stable_mosaic.version = 11 : i64} {
  func.func @_mask_kernel(%arg0: i32, %arg1: memref<1x4x16x16xf32, #tpu.memory_space<vmem>>, %arg2: memref<36xf32, #tpu.memory_space<smem>>, %arg3: memref<1x16x16xf32, #tpu.memory_space<vmem>>, %arg4: memref<18x18xf32, #tpu.memory_space<vmem>>) attributes {dimension_semantics = [#tpu.dimension_semantics<parallel>], iteration_bounds = array<i64: 2>, scalar_prefetch = 0 : i64, scratch_operands = 1 : i64, tpu.core_type = #tpu.core_type<tc>, window_params = [{transform_indices = @transform_0, window_bounds = array<i64: 1, 4, 16, 16>}, {transform_indices = @transform_1, window_bounds = array<i64: 36>}, {transform_indices = @transform_2, window_bounds = array<i64: 1, 16, 16>}]} {
    %cst = arith.constant 0.000000e+00 : f32
    %0 = vector.broadcast %cst : f32 to vector<16x16xf32>
    %cst_0 = arith.constant 0.000000e+00 : f32
    %1 = vector.broadcast %cst_0 : f32 to vector<16x16xf32>
    %cst_1 = arith.constant 0.000000e+00 : f32
    %2 = vector.broadcast %cst_1 : f32 to vector<16x16xf32>
    %cst_2 = arith.constant 0.000000e+00 : f32
    %3 = vector.broadcast %cst_2 : f32 to vector<16x16xf32>
    %cst_3 = arith.constant 0.000000e+00 : f32
    %4 = vector.broadcast %cst_3 : f32 to vector<16x16xf32>
    %cst_4 = arith.constant 0.000000e+00 : f32
    %5 = vector.broadcast %cst_4 : f32 to vector<16x16xf32>
    %cst_5 = arith.constant 0.000000e+00 : f32
    %6 = vector.broadcast %cst_5 : f32 to vector<16x16xf32>
    %cst_6 = arith.constant 0.000000e+00 : f32
    %7 = vector.broadcast %cst_6 : f32 to vector<16x16xf32>
    %cst_7 = arith.constant 0.000000e+00 : f32
    %8 = vector.broadcast %cst_7 : f32 to vector<16x16xf32>
    %c0_i32 = arith.constant 0 : i32
    %c4_i32 = arith.constant 4 : i32
    %9 = arith.addi %c0_i32, %c4_i32 : i32
    %c1_i32 = arith.constant 1 : i32
    %10:9 = scf.for %arg5 = %c0_i32 to %9 step %c1_i32 iter_args(%arg6 = %0, %arg7 = %1, %arg8 = %2, %arg9 = %3, %arg10 = %4, %arg11 = %5, %arg12 = %6, %arg13 = %7, %arg14 = %8) -> (vector<16x16xf32>, vector<16x16xf32>, vector<16x16xf32>, vector<16x16xf32>, vector<16x16xf32>, vector<16x16xf32>, vector<16x16xf32>, vector<16x16xf32>, vector<16x16xf32>)  : i32 {
      %c0_50 = arith.constant 0 : index
      %49 = arith.index_cast %arg5 : i32 to index
      %c0_51 = arith.constant 0 : index
      %c0_52 = arith.constant 0 : index
      %50 = vector.load %arg1[%c0_50, %49, %c0_51, %c0_52] : memref<1x4x16x16xf32, #tpu.memory_space<vmem>>, vector<1x1x16x16xf32>
      %51 = vector.shape_cast %50 : vector<1x1x16x16xf32> to vector<16x16xf32>
      %c9_i32 = arith.constant 9 : i32
      %52 = arith.muli %arg5, %c9_i32 : i32
      %c0_i32_53 = arith.constant 0 : i32
      %53 = arith.addi %52, %c0_i32_53 : i32
      %54 = arith.index_cast %53 : i32 to index
      %55 = memref.load %arg2[%54] : memref<36xf32, #tpu.memory_space<smem>>
      %56 = vector.broadcast %55 : f32 to vector<16x16xf32>
      %57 = arith.mulf %51, %56 : vector<16x16xf32>
      %58 = arith.addf %arg6, %57 : vector<16x16xf32>
      %c1_i32_54 = arith.constant 1 : i32
      %59 = arith.addi %52, %c1_i32_54 : i32
      %60 = arith.index_cast %59 : i32 to index
      %61 = memref.load %arg2[%60] : memref<36xf32, #tpu.memory_space<smem>>
      %62 = vector.broadcast %61 : f32 to vector<16x16xf32>
      %63 = arith.mulf %51, %62 : vector<16x16xf32>
      %64 = arith.addf %arg7, %63 : vector<16x16xf32>
      %c2_i32 = arith.constant 2 : i32
      %65 = arith.addi %52, %c2_i32 : i32
      %66 = arith.index_cast %65 : i32 to index
      %67 = memref.load %arg2[%66] : memref<36xf32, #tpu.memory_space<smem>>
      %68 = vector.broadcast %67 : f32 to vector<16x16xf32>
      %69 = arith.mulf %51, %68 : vector<16x16xf32>
      %70 = arith.addf %arg8, %69 : vector<16x16xf32>
      %c3_i32 = arith.constant 3 : i32
      %71 = arith.addi %52, %c3_i32 : i32
      %72 = arith.index_cast %71 : i32 to index
      %73 = memref.load %arg2[%72] : memref<36xf32, #tpu.memory_space<smem>>
      %74 = vector.broadcast %73 : f32 to vector<16x16xf32>
      %75 = arith.mulf %51, %74 : vector<16x16xf32>
      %76 = arith.addf %arg9, %75 : vector<16x16xf32>
      %c4_i32_55 = arith.constant 4 : i32
      %77 = arith.addi %52, %c4_i32_55 : i32
      %78 = arith.index_cast %77 : i32 to index
      %79 = memref.load %arg2[%78] : memref<36xf32, #tpu.memory_space<smem>>
      %80 = vector.broadcast %79 : f32 to vector<16x16xf32>
      %81 = arith.mulf %51, %80 : vector<16x16xf32>
      %82 = arith.addf %arg10, %81 : vector<16x16xf32>
      %c5_i32 = arith.constant 5 : i32
      %83 = arith.addi %52, %c5_i32 : i32
      %84 = arith.index_cast %83 : i32 to index
      %85 = memref.load %arg2[%84] : memref<36xf32, #tpu.memory_space<smem>>
      %86 = vector.broadcast %85 : f32 to vector<16x16xf32>
      %87 = arith.mulf %51, %86 : vector<16x16xf32>
      %88 = arith.addf %arg11, %87 : vector<16x16xf32>
      %c6_i32 = arith.constant 6 : i32
      %89 = arith.addi %52, %c6_i32 : i32
      %90 = arith.index_cast %89 : i32 to index
      %91 = memref.load %arg2[%90] : memref<36xf32, #tpu.memory_space<smem>>
      %92 = vector.broadcast %91 : f32 to vector<16x16xf32>
      %93 = arith.mulf %51, %92 : vector<16x16xf32>
      %94 = arith.addf %arg12, %93 : vector<16x16xf32>
      %c7_i32 = arith.constant 7 : i32
      %95 = arith.addi %52, %c7_i32 : i32
      %96 = arith.index_cast %95 : i32 to index
      %97 = memref.load %arg2[%96] : memref<36xf32, #tpu.memory_space<smem>>
      %98 = vector.broadcast %97 : f32 to vector<16x16xf32>
      %99 = arith.mulf %51, %98 : vector<16x16xf32>
      %100 = arith.addf %arg13, %99 : vector<16x16xf32>
      %c8_i32 = arith.constant 8 : i32
      %101 = arith.addi %52, %c8_i32 : i32
      %102 = arith.index_cast %101 : i32 to index
      %103 = memref.load %arg2[%102] : memref<36xf32, #tpu.memory_space<smem>>
      %104 = vector.broadcast %103 : f32 to vector<16x16xf32>
      %105 = arith.mulf %51, %104 : vector<16x16xf32>
      %106 = arith.addf %arg14, %105 : vector<16x16xf32>
      scf.yield %58, %64, %70, %76, %82, %88, %94, %100, %106 : vector<16x16xf32>, vector<16x16xf32>, vector<16x16xf32>, vector<16x16xf32>, vector<16x16xf32>, vector<16x16xf32>, vector<16x16xf32>, vector<16x16xf32>, vector<16x16xf32>
    }
    %c4_i32_8 = arith.constant 4 : i32
    %cst_9 = arith.constant 0.000000e+00 : f32
    %11 = vector.broadcast %cst_9 : f32 to vector<18x18xf32>
    %c0 = arith.constant 0 : index
    %c0_10 = arith.constant 0 : index
    %12 = vector.load %arg4[%c0, %c0_10] : memref<18x18xf32, #tpu.memory_space<vmem>>, vector<18x18xf32>
    tpu.vector_store %arg4[%c0, %c0_10], %11 {strides = array<i32>} : memref<18x18xf32, #tpu.memory_space<vmem>>, vector<18x18xf32>,
    %cst_11 = arith.constant 0.000000e+00 : f32
    %13 = vector.broadcast %cst_11 : f32 to vector<16x16xf32>
    %c1 = arith.constant 1 : index
    %c1_12 = arith.constant 1 : index
    %14 = vector.load %arg4[%c1, %c1_12] : memref<18x18xf32, #tpu.memory_space<vmem>>, vector<16x16xf32>
    tpu.vector_store %arg4[%c1, %c1_12], %10#0 {strides = array<i32>} : memref<18x18xf32, #tpu.memory_space<vmem>>, vector<16x16xf32>,
    %c0_13 = arith.constant 0 : index
    %c0_14 = arith.constant 0 : index
    %15 = vector.load %arg4[%c0_13, %c0_14] : memref<18x18xf32, #tpu.memory_space<vmem>>, vector<16x16xf32>
    %16 = arith.addf %13, %15 : vector<16x16xf32>
    %c1_15 = arith.constant 1 : index
    %c1_16 = arith.constant 1 : index
    %17 = vector.load %arg4[%c1_15, %c1_16] : memref<18x18xf32, #tpu.memory_space<vmem>>, vector<16x16xf32>
    tpu.vector_store %arg4[%c1_15, %c1_16], %10#1 {strides = array<i32>} : memref<18x18xf32, #tpu.memory_space<vmem>>, vector<16x16xf32>,
    %c0_17 = arith.constant 0 : index
    %c1_18 = arith.constant 1 : index
    %18 = vector.load %arg4[%c0_17, %c1_18] : memref<18x18xf32, #tpu.memory_space<vmem>>, vector<16x16xf32>
    %19 = arith.addf %16, %18 : vector<16x16xf32>
    %c1_19 = arith.constant 1 : index
    %c1_20 = arith.constant 1 : index
    %20 = vector.load %arg4[%c1_19, %c1_20] : memref<18x18xf32, #tpu.memory_space<vmem>>, vector<16x16xf32>
    tpu.vector_store %arg4[%c1_19, %c1_20], %10#2 {strides = array<i32>} : memref<18x18xf32, #tpu.memory_space<vmem>>, vector<16x16xf32>,
    %c0_21 = arith.constant 0 : index
    %c2 = arith.constant 2 : index
    %21 = vector.load %arg4[%c0_21, %c2] : memref<18x18xf32, #tpu.memory_space<vmem>>, vector<16x16xf32>
    %22 = arith.addf %19, %21 : vector<16x16xf32>
    %c1_22 = arith.constant 1 : index
    %c1_23 = arith.constant 1 : index
    %23 = vector.load %arg4[%c1_22, %c1_23] : memref<18x18xf32, #tpu.memory_space<vmem>>, vector<16x16xf32>
    tpu.vector_store %arg4[%c1_22, %c1_23], %10#3 {strides = array<i32>} : memref<18x18xf32, #tpu.memory_space<vmem>>, vector<16x16xf32>,
    %c1_24 = arith.constant 1 : index
    %c0_25 = arith.constant 0 : index
    %24 = vector.load %arg4[%c1_24, %c0_25] : memref<18x18xf32, #tpu.memory_space<vmem>>, vector<16x16xf32>
    %25 = arith.addf %22, %24 : vector<16x16xf32>
    %c1_26 = arith.constant 1 : index
    %c1_27 = arith.constant 1 : index
    %26 = vector.load %arg4[%c1_26, %c1_27] : memref<18x18xf32, #tpu.memory_space<vmem>>, vector<16x16xf32>
    tpu.vector_store %arg4[%c1_26, %c1_27], %10#4 {strides = array<i32>} : memref<18x18xf32, #tpu.memory_space<vmem>>, vector<16x16xf32>,
    %c1_28 = arith.constant 1 : index
    %c1_29 = arith.constant 1 : index
    %27 = vector.load %arg4[%c1_28, %c1_29] : memref<18x18xf32, #tpu.memory_space<vmem>>, vector<16x16xf32>
    %28 = arith.addf %25, %27 : vector<16x16xf32>
    %c1_30 = arith.constant 1 : index
    %c1_31 = arith.constant 1 : index
    %29 = vector.load %arg4[%c1_30, %c1_31] : memref<18x18xf32, #tpu.memory_space<vmem>>, vector<16x16xf32>
    tpu.vector_store %arg4[%c1_30, %c1_31], %10#5 {strides = array<i32>} : memref<18x18xf32, #tpu.memory_space<vmem>>, vector<16x16xf32>,
    %c1_32 = arith.constant 1 : index
    %c2_33 = arith.constant 2 : index
    %30 = vector.load %arg4[%c1_32, %c2_33] : memref<18x18xf32, #tpu.memory_space<vmem>>, vector<16x16xf32>
    %31 = arith.addf %28, %30 : vector<16x16xf32>
    %c1_34 = arith.constant 1 : index
    %c1_35 = arith.constant 1 : index
    %32 = vector.load %arg4[%c1_34, %c1_35] : memref<18x18xf32, #tpu.memory_space<vmem>>, vector<16x16xf32>
    tpu.vector_store %arg4[%c1_34, %c1_35], %10#6 {strides = array<i32>} : memref<18x18xf32, #tpu.memory_space<vmem>>, vector<16x16xf32>,
    %c2_36 = arith.constant 2 : index
    %c0_37 = arith.constant 0 : index
    %33 = vector.load %arg4[%c2_36, %c0_37] : memref<18x18xf32, #tpu.memory_space<vmem>>, vector<16x16xf32>
    %34 = arith.addf %31, %33 : vector<16x16xf32>
    %c1_38 = arith.constant 1 : index
    %c1_39 = arith.constant 1 : index
    %35 = vector.load %arg4[%c1_38, %c1_39] : memref<18x18xf32, #tpu.memory_space<vmem>>, vector<16x16xf32>
    tpu.vector_store %arg4[%c1_38, %c1_39], %10#7 {strides = array<i32>} : memref<18x18xf32, #tpu.memory_space<vmem>>, vector<16x16xf32>,
    %c2_40 = arith.constant 2 : index
    %c1_41 = arith.constant 1 : index
    %36 = vector.load %arg4[%c2_40, %c1_41] : memref<18x18xf32, #tpu.memory_space<vmem>>, vector<16x16xf32>
    %37 = arith.addf %34, %36 : vector<16x16xf32>
    %c1_42 = arith.constant 1 : index
    %c1_43 = arith.constant 1 : index
    %38 = vector.load %arg4[%c1_42, %c1_43] : memref<18x18xf32, #tpu.memory_space<vmem>>, vector<16x16xf32>
    tpu.vector_store %arg4[%c1_42, %c1_43], %10#8 {strides = array<i32>} : memref<18x18xf32, #tpu.memory_space<vmem>>, vector<16x16xf32>,
    %c2_44 = arith.constant 2 : index
    %c2_45 = arith.constant 2 : index
    %39 = vector.load %arg4[%c2_44, %c2_45] : memref<18x18xf32, #tpu.memory_space<vmem>>, vector<16x16xf32>
    %40 = arith.addf %37, %39 : vector<16x16xf32>
    %41 = arith.negf %40 : vector<16x16xf32>
    %42 = math.exp %41 : vector<16x16xf32>
    %cst_46 = arith.constant 1.000000e+00 : f32
    %43 = vector.broadcast %cst_46 : f32 to vector<16x16xf32>
    %44 = arith.addf %43, %42 : vector<16x16xf32>
    %45 = arith.divf %43, %44 : vector<16x16xf32>
    %c0_47 = arith.constant 0 : index
    %c0_48 = arith.constant 0 : index
    %c0_49 = arith.constant 0 : index
    %46 = vector.load %arg3[%c0_47, %c0_48, %c0_49] : memref<1x16x16xf32, #tpu.memory_space<vmem>>, vector<1x16x16xf32>
    %47 = vector.shape_cast %46 : vector<1x16x16xf32> to vector<16x16xf32>
    %48 = vector.shape_cast %45 : vector<16x16xf32> to vector<1x16x16xf32>
    tpu.vector_store %arg3[%c0_47, %c0_48, %c0_49], %48 {strides = array<i32>} : memref<1x16x16xf32, #tpu.memory_space<vmem>>, vector<1x16x16xf32>,
    return
  }
  func.func @transform_0(%arg0: i32) -> (i32, i32, i32, i32) {
    %c0_i32 = arith.constant 0 : i32
    %c0_i32_0 = arith.constant 0 : i32
    %c0_i32_1 = arith.constant 0 : i32
    %c0_i32_2 = arith.constant 0 : i32
    return %arg0, %c0_i32, %c0_i32_0, %c0_i32_1 : i32, i32, i32, i32
  }
  func.func @transform_1(%arg0: i32) -> i32 {
    %c0_i32 = arith.constant 0 : i32
    %c0_i32_0 = arith.constant 0 : i32
    return %c0_i32 : i32
  }
  func.func @transform_2(%arg0: i32) -> (i32, i32, i32) {
    %c0_i32 = arith.constant 0 : i32
    %c0_i32_0 = arith.constant 0 : i32
    %c0_i32_1 = arith.constant 0 : i32
    return %arg0, %c0_i32, %c0_i32_0 : i32, i32, i32
  }
}

</mosaic_0001>

<bundles_post_ra>
// kernel: tpu_custom_call.1
= control target key start
LH: loop header
LB: loop body
LE: loop exit
PB: predicated region body
PF: predicated region fallthrough
CT: control target
= control target key end

     0   :  { %s1542_s0 = inlined_call_operand.hbm [shape: f32[2,4,16,16], index: 0, kind: input, shape index: {}]   ;;  %s1543_s1 = inlined_call_operand.vmem [shape: f32[36], index: 1, kind: input, shape index: {}]   ;;  %s1544_s2 = inlined_call_operand.hbm [shape: f32[2,16,16], index: 2, kind: output, shape index: {}]  }
   0x1   :  { %1549 = sst [smem:[#allocation12_spill]] %s1542_s0 }
   0x2   :  { %7 = vsyncpa [#allocation4], 0 }
   0x3   :  { %9 = vsyncpa [#allocation4 + $0x1], 0 }
   0x4   :  { %10 = vsyncpa [#allocation6], 0 }
   0x5   :  { %11 = vsyncpa [#allocation5], 0 }
   0x6   :  { %13 = vsyncpa [#allocation5 + $0x1], 0  ;;  %s1159_s9 = smov 0   ;;  %s1161_s10 = smov 0  }
   0x7   :  { %s1163_s11 = smov 0   ;;  %s1165_s12 = smov 0  }
   0x8 LB: > { %s1180_s13 = sadd.s32 4294967295, %s1055_s12   ;;  %s622_s14 = sadd.s32 4294967294, %s1055_s12   ;;  %s1055_s12 = sphi %s1165_s12, %s1590_s12   ;;  %s1051_s11 = sphi %s1163_s11, %s1589_s11   ;;  %s1047_s10 = sphi %s1161_s10, %s1588_s10   ;;  %s1043_s9 = sphi %s1159_s9, %s1587_s9  }
   0x9   : > { %s1184_s15 = sadd.s32 1, %s1055_s12   ;;  %s26_s16 = sadd.s32 1, %s1051_s11 }
   0xa   : > { %s23_s17 = ssub.s32 %s1055_s12, %s1184_s15  ;;  %p33_p0 = scmp.ne.s32.totalorder %s1051_s11, %s1047_s10 }
   0xb   : > { %p24_p1 = scmp.eq.s32.totalorder %s23_s17, 0  ;;  %p34_p2 = scmp.eq.s32.totalorder %s1055_s12, 0 }
   0xc   : > { %p39_p3 = scmp.ne.s32.totalorder %s1047_s10, %s1043_s9  ;;  %p1546_p4 = scmp.eq.s32.totalorder %s1180_s13, 0 }
   0xd   : > { %s1196_s18 = scalar_select %p24_p1, %s1051_s11, %s26_s16  }
   0xe   : > { %p1198_p5 = por %p34_p2, %p33_p0  ;;  %p1204_p6 = por %p1546_p4, %p39_p3 }
   0xf   : > { %p84_p7 = scmp.eq.s32.totalorder %s1180_s13, 1  ;;  %p90_p8 = scmp.eq.s32.totalorder %s622_s14, 1 }
  0x10   : > { %s1551_s20 = scalar_select %p1204_p6, 1, 0 }
  0x11   : > { %p623_p9 = scmp.ge.s32.totalorder %s1055_s12, 1  ;;  %p97_p10 = scmp.lt.s32.totalorder %s1055_s12, 3 }
  0x12   : > { %p1211_p11 = por %p84_p7, %p33_p0  ;;  %p1215_p12 = por %p90_p8, %p39_p3 }
  0x13   : > { %p1219_p13 = pnand %p623_p9, %p97_p10  ;;  %s110_s26 = sshll.u32 %s1543_s1, 4  ;;  %s111_s26 = int_to_ptr.vmem [resolvable:$true] %s110_s26 }
  0x14   : > { %s1552_s21 = scalar_select %p1211_p11, 1, 0 }
  0x15   : > { %s1553_s22 = scalar_select %p1215_p12, 1, 0 }
  0x16   : > { %s1554_s23 = scalar_select %p1219_p13, 1, 0 }
  0x17   : > { %p651_p1 = pneg %p1219_p13  ;;  %p664_p2 = scmp.lt.s32.totalorder %s1055_s12, 2 }
  0x18   : > { %s121_s28 = sand.u32 1, %s1051_s11   ;;  %s868_s3 = scalar_lea.vmem %s111_s26, 16 }
  0x19   : > { %p1232_p7 = pnand %p651_p1, %p1546_p4  ;;  %p1239_p3 = pnand %p664_p2, %p1198_p5 }
  0x1a   : > { %s626_s30 = sshll.u32 %s121_s28, 6  ;;  %p869_p8 = scmp.ne.s32.totalorder %s111_s26, %s868_s3 }
  0x1b   : > { %p870_p9 = pneg %p1232_p7  ;;  %p876_p12 = scmp.lt.s32.totalorder %s111_s26, %s111_s26 }
  0x1c   : > { %p877_p11 = scmp.lt.s32.totalorder %s868_s3, %s868_s3 }
  0x1d   : > { %p871_p10 = pnand %p870_p9, %p869_p8 }
  0x1e   : > { %p878_p1 = por %p877_p11, %p876_p12 }
  0x1f   : > { %p872_p0 = pneg %p871_p10 }
  0x21   : > { %p879_p4 = pnand %p878_p1, %p872_p0 }
  0x23   : > { %882 = shalt.err (!%p879_p4)
}
  0x24   : > { %s1133_s4 = smov [#allocation7]   ;;  %s641_s5 = sshll.u32 %s1055_s12, 10 }
  0x25   : > { %654 = dma.vmem_to_smem (!%p1232_p7), %s111_s26, 16, %s1133_s4, [#allocation6]  }
  0x26   : > { %s125_s6 = scalar_lea.vmem [#allocation3], %s626_s30  ;;  %s1557_s0 = sld [smem:[#allocation12_spill]] }
  0x27   : > { %s132_s7 = sshll.u32 %s125_s6, 4  ;;  %s1255_s17 = scalar_lea.sflag [#allocation4], %s121_s28  ;;  %s1253_s7 = int_to_ptr.vmem [resolvable:$true] %s132_s7 }
  0x28   : > { %p885_p5 = pneg %p1239_p3 }
  0x2c   : > { %s1251_s16 = scalar_lea.hbm %s1557_s0, %s641_s5  ;;  %s888_s26 = scalar_lea.hbm %s1557_s0, 2048 }
  0x2d   : > { %s883_s19 = scalar_lea.hbm %s1251_s16, 1024  ;;  %p889_p0 = scmp.lt.s32.totalorder %s1251_s16, %s1557_s0 }
  0x2e   : > { %p884_p4 = scmp.ne.s32.totalorder %s1251_s16, %s883_s19  ;;  %p890_p2 = scmp.lt.s32.totalorder %s888_s26, %s883_s19 }
  0x30   : > { %p886_p11 = pnand %p885_p5, %p884_p4  ;;  %p891_p7 = por %p890_p2, %p889_p0 }
  0x32   : > { %p887_p12 = pneg %p886_p11 }
  0x34   : > { %p892_p8 = pnand %p891_p7, %p887_p12 }
  0x36   : > { %895 = shalt.err (!%p892_p8)
}
  0x37   : > { %s896_s28 = scalar_lea.vmem %s1253_s7, 1024  ;;  %s1134_s3 = smov [#allocation3]  }
  0x38   : > { %p897_p9 = scmp.ne.s32.totalorder %s1253_s7, %s896_s28  ;;  %s901_s4 = sshll.u32 %s1134_s3, 4  ;;  %s902_s4 = int_to_ptr.vmem [resolvable:$false] %s901_s4 }
  0x39   : > { %s903_s5 = scalar_lea.vmem %s902_s4, 2048  ;;  %p904_p4 = scmp.lt.s32.totalorder %s1253_s7, %s902_s4 }
  0x3a   : > { %p899_p10 = pnand %p897_p9, %p885_p5  ;;  %p905_p11 = scmp.lt.s32.totalorder %s903_s5, %s896_s28 }
  0x3c   : > { %p900_p1 = pneg %p899_p10  ;;  %p906_p6 = por %p905_p11, %p904_p4 }
  0x3e   : > { %p907_p13 = pnand %p906_p6, %p900_p1 }
  0x40   : > { %910 = shalt.err (!%p907_p13)
}
  0x41   : > { %s1135_s6 = smov 128   ;;  %s1136_s8 = smov 8  }
  0x42   : > { %658 = dma.hbm_to_vmem [thread:$0]  (!%p1239_p3), %s1251_s16, 1024, %s1253_s7, %s1255_s17, %s1135_s6, %s1135_s6, %s1136_s8  }
  0x43   : > { %p1558_p5 = scmp.ne.s32.totalorder %s1554_s23, 0 }
  0x44   : > { %s1279_s14 = sand.u32 (!%p1558_p5), 1, %s1047_s10   ;;  %p1559_p6 = scmp.ne.s32.totalorder (!%p1558_p5), %s1551_s20, 0 }
  0x45   : > { %144 = sbr.rel (%p1558_p5) target bundleno = 454 (0x1c6), region = 28  ;;  %s630_s19 = sshll.u32 (!%p1558_p5), %s1279_s14, 6 }
  0x46   : > { %s147_s24 = scalar_lea.sflag (!%p1558_p5), [#allocation4], %s1279_s14  ;;  %s1283_s25 = scalar_lea.vmem (!%p1558_p5), [#allocation3], %s630_s19 }
  0x4a   : > { %1030 = dma.done.wait (%p1559_p6), %s147_s24, 1024  }
  0x4b   : > { %1032 = vsyncadd (%p1559_p6), %s147_s24, 4294966272  ;;  %p1560_p13 = scmp.eq.s32.totalorder %s1180_s13, 0 }
  0x4d   : > { %1034 = dma.done.wait (%p1560_p13), [#allocation6], 16   ;;  %p1561_p3 = pmov %p1560_p13 }
  0x4f   : > { %1036 = vsyncadd (%p1561_p3), [#allocation6], 4294967280 }
  0x50   : > { %159 = sfence }
  0x51   : > { %s632_s23 = sshll.u32 %s1279_s14, 4  ;;  %v1296_v0 = vmov 0.0   ;;  %v1298_v1 = vmov 0.0   ;;  %v1300_v2 = vmov 0.0   ;;  %v1302_v3 = vmov 0.0   ;;  %s1332_s20 = smov 0  }
  0x52   : > { %s1294_s29 = scalar_lea.vmem [#allocation8], %s632_s23  ;;  %v1304_v4 = vmov 0.0   ;;  %v1306_v5 = vmov 0.0   ;;  %v1308_v6 = vmov 0.0   ;;  %v1310_v7 = vmov 0.0  }
  0x53   : > { %v1312_v8 = vmov 0.0   ;;  %v1314_v9 = vmov 0.0   ;;  %v1316_v10 = vmov 0.0   ;;  %v1318_v11 = vmov 0.0  }
  0x54   : > { %v1320_v12 = vmov 0.0   ;;  %v1322_v13 = vmov 0.0   ;;  %v1324_v14 = vmov 0.0   ;;  %v1326_v15 = vmov 0.0  }
  0x55   : > { %v1328_v16 = vmov 0.0   ;;  %v1330_v17 = vmov 0.0  }
  0x56 LB: >> { %s633_s7 = sshll.u32 %s1131_s20, 4  ;;  %s204_s16 = smul.u32 9, %s1131_s20  ;;  %s1131_s20 = sphi %s1332_s20, %s181_s20   ;;  %v1127_v17 = vphi %v1330_v17, %v1583_v17   ;;  %v1123_v16 = vphi %v1328_v16, %v1582_v16   ;;  %v1119_v15 = vphi %v1326_v15, %v1581_v15   ;;  %v1115_v14 = vphi %v1324_v14, %v1580_v14   ;;  %v1111_v13 = vphi %v1322_v13, %v1579_v13   ;;  %v1107_v12 = vphi %v1320_v12, %v1578_v12   ;;  %v1103_v11 = vphi %v1318_v11, %v1577_v11   ;;  %v1099_v10 = vphi %v1316_v10, %v1576_v10   ;;  %v1095_v9 = vphi %v1314_v9, %v1575_v9   ;;  %v1091_v8 = vphi %v1312_v8, %v1574_v8   ;;  %v1087_v7 = vphi %v1310_v7, %v1573_v7   ;;  %v1083_v6 = vphi %v1308_v6, %v1572_v6   ;;  %v1079_v5 = vphi %v1306_v5, %v1571_v5   ;;  %v1075_v4 = vphi %v1304_v4, %v1570_v4   ;;  %v1071_v3 = vphi %v1302_v3, %v1569_v3   ;;  %v1067_v2 = vphi %v1300_v2, %v1568_v2   ;;  %v1063_v1 = vphi %v1298_v1, %v1567_v1   ;;  %v1059_v0 = vphi %v1296_v0, %v1566_v0  }
  0x57   : >> { %s201_s17 = scalar_lea.vmem %s1283_s25, %s633_s7 [#allocation3]  ;;  %s181_s20 = sadd.s32 1, %s1131_s20  }
  0x58   : >> { %s205_s26 = sld [smem:[#allocation7 + %s204_s16]]  ;;  %s211_s27 = sadd.s32 1, %s204_s16  ;;  %v202_v18 = vld [vmem:[%s201_s17] sm:$0xff]  ;;  %v203_v19 = vld [vmem:[%s201_s17 + $0x8] sm:$0xff] }
  0x59   : >> { %s212_s30 = sld [smem:[#allocation7 + %s211_s27]]  ;;  %s218_s28 = sadd.s32 2, %s204_s16 }
  0x5a   : >> { %s219_s3 = sld [smem:[#allocation7 + %s218_s28]]  ;;  %s225_s4 = sadd.s32 3, %s204_s16 }
  0x5b   : >> { %s1374_s5 = sld [smem:[#allocation7 + %s225_s4]]  ;;  %s232_s6 = sadd.s32 4, %s204_s16 }
  0x5c   : >> { %s233_s8 = sld [smem:[#allocation7 + %s232_s6]]  ;;  %s239_s19 = sadd.s32 5, %s204_s16 }
  0x5d   : >> { %s1376_s24 = sld [smem:[#allocation7 + %s239_s19]]  ;;  %s246_s23 = sadd.s32 6, %s204_s16 }
  0x5e   : >> { %v206_v20 = vstv %s205_s26  ;;  %s1378_s0 = sld [smem:[#allocation7 + %s246_s23]]  ;;  %s253_s7 = sadd.s32 7, %s204_s16 }
  0x5f   : >> { %v207_v21 = vmul.f32 %v206_v20, %v202_v18  ;;  %v208_v22 = vmul.f32 %v206_v20, %v203_v19  ;;  %v213_v23 = vstv %s212_s30  ;;  %s1380_s27 = sld [smem:[#allocation7 + %s253_s7]]  ;;  %s260_s28 = sadd.s32 8, %s204_s16 }
  0x60   : >> { %v214_v24 = vmul.f32 %v213_v23, %v202_v18  ;;  %v215_v25 = vmul.f32 %v213_v23, %v203_v19  ;;  %v220_v26 = vstv %s219_s3  ;;  %s1382_s17 = sld [smem:[#allocation7 + %s260_s28]]  ;;  %p1404_p12 = scmp.ge.s32.totalorder %s181_s20, 4  }
  0x61   : >> { %v209_v27 = vadd.f32 %v1127_v17, %v207_v21   ;;  %v1384_v16 = vadd.f32 %v1123_v16, %v208_v22   ;;  %v221_v29 = vmul.f32 %v220_v26, %v202_v18  ;;  %v222_v30 = vmul.f32 %v220_v26, %v203_v19  ;;  %s1137_s16 = smov (%p1404_p12), 1   ;;  %s1139_s25 = smov (%p1404_p12), 127  }
  0x62   : >> { %v216_v31 = vadd.f32 %v1119_v15, %v214_v24   ;;  %v1386_v14 = vadd.f32 %v1115_v14, %v215_v25   ;;  %v227_v33 = vstv %s1374_s5  ;;  %v234_v34 = vstv %s233_s8  ;;  %s1140_s20 = smov (%p1404_p12), 126   ;;  %s642_s26 = sshll.u32 (%p1404_p12), %s1180_s13, 8 }
  0x63   : >> { %v1562_v28 = vmov %v1384_v16  ;;  %v1389_v13 = vadd.f32 %v1111_v13, %v221_v29   ;;  %v224_v36 = vadd.f32 %v1107_v12, %v222_v30   ;;  %v228_v37 = vmul.f32 %v227_v33, %v202_v18  ;;  %274 = vrot.lane.b32.xlu0 (%p1404_p12), %v209_v27, %s1137_s16  ;;  %s476_s30 = sshll.u32 (%p1404_p12), %s1294_s29, 4  ;;  %s1495_s5 = scalar_lea.hbm (%p1404_p12), %s1544_s2, %s642_s26  ;;  %s1497_s30 = int_to_ptr.vmem [resolvable:$true] %s476_s30 }
  0x64   : >> { %v1563_v32 = vmov %v1386_v14  ;;  %v229_v38 = vmul.f32 %v227_v33, %v203_v19  ;;  %v235_v39 = vmul.f32 %v234_v34, %v202_v18  ;;  %v236_v40 = vmul.f32 %v234_v34, %v203_v19  ;;  %289 = vrot.lane.b32.xlu1 (%p1404_p12), %v216_v31, %s1137_s16  ;;  %s463_s6 = scalar_lea.sflag (%p1404_p12), [#allocation5], %s1279_s14  ;;  %s911_s8 = scalar_lea.vmem (%p1404_p12), %s1497_s30, 256 }
  0x65   : >> { %v1564_v35 = vmov %v1389_v13  ;;  %v241_v41 = vstv %s1376_s24  ;;  %v248_v42 = vstv %s1378_s0  ;;  %v230_v43 = vadd.f32 %v1103_v11, %v228_v37   ;;  %p912_p0 = scmp.ne.s32.totalorder (%p1404_p12), %s1497_s30, %s911_s8  ;;  %p1584_p2 = scmp.ne.s32.totalorder (%p1404_p12), %s1552_s21, 0 }
  0x66   : >> { %v231_v44 = vadd.f32 %v1099_v10, %v229_v38   ;;  %v242_v45 = vmul.f32 %v241_v41, %v202_v18  ;;  %v243_v46 = vmul.f32 %v241_v41, %v203_v19  ;;  %v237_v47 = vadd.f32 %v1095_v9, %v235_v39   ;;  %s1141_s13 = smov (%p1404_p12), [#allocation8]  }
  0x67   : >> { %v238_v48 = vadd.f32 %v1091_v8, %v236_v40   ;;  %v249_v49 = vmul.f32 %v248_v42, %v202_v18  ;;  %v250_v50 = vmul.f32 %v248_v42, %v203_v19  ;;  %v255_v53 = vstv %s1380_s27  ;;  %276 = vrot.lane.b32.xlu0 (%p1404_p12), %v1562_v28, %s1137_s16  ;;  %p913_p7 = pnand (%p1404_p12), %p912_p0, %p1584_p2  ;;  %s915_s19 = sshll.u32 (%p1404_p12), %s1141_s13, 4  ;;  %s916_s19 = int_to_ptr.vmem [resolvable:$false] %s915_s19 }
  0x68   : >> { %v244_v51 = vadd.f32 %v1087_v7, %v242_v45   ;;  %v245_v52 = vadd.f32 %v1083_v6, %v243_v46   ;;  %v262_v54 = vstv %s1382_s17  ;;  %v256_v57 = vmul.f32 %v255_v53, %v202_v18  ;;  %291 = vrot.lane.b32.xlu1 (%p1404_p12), %v1563_v32, %s1137_s16  ;;  %s917_s24 = scalar_lea.vmem (%p1404_p12), %s916_s19, 512  ;;  %p918_p9 = scmp.lt.s32.totalorder (%p1404_p12), %s1497_s30, %s916_s19 }
  0x69   : >> { %v251_v55 = vadd.f32 %v1079_v5, %v249_v49   ;;  %v252_v56 = vadd.f32 %v1075_v4, %v250_v50   ;;  %v257_v58 = vmul.f32 %v255_v53, %v203_v19  ;;  %v263_v59 = vmul.f32 %v262_v54, %v202_v18  ;;  %p914_p8 = pneg (%p1404_p12), %p913_p7  ;;  %p919_p10 = scmp.lt.s32.totalorder (%p1404_p12), %s917_s24, %s911_s8 }
  0x6a   : >> { %v264_v60 = vmul.f32 %v262_v54, %v203_v19  ;;  %v258_v61 = vadd.f32 %v1071_v3, %v256_v57   ;;  %v1572_v6 = vmov %v245_v52  ;;  %v1573_v7 = vmov %v244_v51 }
  0x6b   : >> { %v259_v62 = vadd.f32 %v1067_v2, %v257_v58   ;;  %v265_v63 = vadd.f32 %v1063_v1, %v263_v59   ;;  %v1570_v4 = vmov %v252_v56  ;;  %v1571_v5 = vmov %v251_v55  ;;  %180 = sbr.rel (!%p1404_p12) target bundleno = 86 (0x56), region = 86  ;;  %311 = vrot.lane.b32.xlu0 (%p1404_p12), %v1564_v35, %s1137_s16  ;;  %p920_p1 = por (%p1404_p12), %p919_p10, %p918_p9 }
  0x6c   : >> { %v266_v20 = vadd.f32 %v1059_v0, %v264_v60   ;;  %v1569_v3 = vmov %v258_v61  ;;  %v1574_v8 = vmov %v238_v48  ;;  %v1575_v9 = vmov %v237_v47  ;;  %313 = vrot.lane.b32.xlu1 (%p1404_p12), %v224_v36, %s1137_s16 }
  0x6d   : >> { %v1567_v1 = vmov %v265_v63  ;;  %v1568_v2 = vmov %v259_v62  ;;  %v1576_v10 = vmov %v231_v44  ;;  %v1577_v11 = vmov %v230_v43  ;;  %p921_p4 = pnand (%p1404_p12), %p920_p1, %p914_p8 }
  0x6e   : >> { %v1566_v0 = vmov %v266_v20  ;;  %v1578_v12 = vmov %v224_v36  ;;  %v1579_v13 = vmov %v1564_v35  ;;  %v1580_v14 = vmov %v1563_v32 }
  0x6f   : >> { %v1581_v15 = vmov %v216_v31  ;;  %v1582_v16 = vmov %v1562_v28  ;;  %v1583_v17 = vmov %v209_v27  ;;  %vm267_vm0 = vcmask (%p1404_p12), 146432   ;;  %333 = vrot.lane.b32.xlu0 (%p1404_p12), %v230_v43, %s1137_s16 }
  0x70   : > { %vm270_vm1 = vcmask 140288   ;;  %v1138_v17 = vmov 0.0   ;;  %335 = vrot.lane.b32.xlu1 %v231_v44, %s1137_s16  ;;  %vm280_vm2 = vcmask 138248   ;;  %vm459_vm3 = vcmask 130048  }
  0x71   : > { %268 = vst.msk [vmem:[#allocation2] sm:$0xff] %vm267_vm0, %v1138_v17  ;;  %269 = vst.msk [vmem:[#allocation2 + $0x8] sm:$0xff] %vm267_vm0, %v1138_v17 }
  0x72   : > { %271 = vst.msk [vmem:[#allocation2 + $0x10] sm:$0x3] %vm270_vm1, %v1138_v17 }
  0x73   : > { %347 = vrot.lane.b32.xlu0 %v237_v47, %s1137_s16 }
  0x74   : > { %349 = vrot.lane.b32.xlu1 %v238_v48, %s1137_s16 }
  0x77   : > { %369 = vrot.lane.b32.xlu0 %v244_v51, %s1137_s16 }
  0x78   : > { %371 = vrot.lane.b32.xlu1 %v245_v52, %s1137_s16 }
  0x7b   : > { %391 = vrot.lane.b32.xlu0 %v251_v55, %s1137_s16 }
  0x7c   : > { %393 = vrot.lane.b32.xlu1 %v252_v56, %s1137_s16 }
  0x7f   : > { %405 = vrot.lane.b32.xlu0 %v258_v61, %s1137_s16 }
  0x80   : > { %407 = vrot.lane.b32.xlu1 %v259_v62, %s1137_s16 }
  0x83   : > { %427 = vrot.lane.b32.xlu0 %v265_v63, %s1137_s16 }
  0x84   : > { %429 = vrot.lane.b32.xlu1 %v266_v20, %s1137_s16 }
  0xd5   : > { %v275_v0 = vpop.permute.xlu0 %274 }
  0xd6   : > { %281 = vst.msk [vmem:[#allocation2 + $0x1] sm:$0xff] %vm280_vm2, %v275_v0  ;;  %v290_v2 = vpop.permute.xlu1 %289 }
  0xd9   : > { %v277_v1 = vpop.permute.xlu0 %276 }
  0xda   : > { %282 = vst.msk [vmem:[#allocation2 + $0x9] sm:$0xff] %vm280_vm2, %v277_v1  ;;  %v292_v3 = vpop.permute.xlu1 %291 }
  0xdd   : > { %v1458_v5 = vld [vmem:[#allocation2] sm:$0xff]  ;;  %v312_v7 = vpop.permute.xlu0 %311 }
  0xde   : > { %v314_v6 = vpop.permute.xlu1 %313 }
  0xe1   : > { %v1456_v4 = vld [vmem:[#allocation2 + $0x8] sm:$0xff]  ;;  %v334_v11 = vpop.permute.xlu0 %333 }
  0xe2   : > { %295 = vst.msk [vmem:[#allocation2 + $0x1] sm:$0xff] %vm280_vm2, %v290_v2  ;;  %296 = vst.msk [vmem:[#allocation2 + $0x9] sm:$0xff] %vm280_vm2, %v292_v3  ;;  %v336_v10 = vpop.permute.xlu1 %335 }
  0xe5   : > { %v348_v15 = vpop.permute.xlu0 %347 }
  0xe6   : > { %v350_v14 = vpop.permute.xlu1 %349 }
  0xe9   : > { %v298_v8 = vld [vmem:[#allocation2 + $0x8] sm:$0xff]  ;;  %v297_v9 = vld [vmem:[#allocation2] sm:$0xff]  ;;  %v370_v21 = vpop.permute.xlu0 %369 }
  0xea   : > { %318 = vst.msk [vmem:[#allocation2 + $0x9] sm:$0xff] %vm280_vm2, %v314_v6  ;;  %317 = vst.msk [vmem:[#allocation2 + $0x1] sm:$0xff] %vm280_vm2, %v312_v7  ;;  %303 = vrot.lane.b32.xlu1 %v298_v8, %s1139_s25  ;;  %301 = vrot.lane.b32.xlu0 %v297_v9, %s1139_s25  ;;  %v372_v19 = vpop.permute.xlu1 %371 }
  0xed   : > { %v392_v25 = vpop.permute.xlu0 %391 }
  0xee   : > { %v394_v24 = vpop.permute.xlu1 %393 }
  0xf1   : > { %v320_v12 = vld [vmem:[#allocation2 + $0x8] sm:$0xff]  ;;  %v319_v13 = vld [vmem:[#allocation2] sm:$0xff]  ;;  %v406_v29 = vpop.permute.xlu0 %405 }
  0xf2   : > { %340 = vst.msk [vmem:[#allocation2 + $0x9] sm:$0xff] %vm280_vm2, %v336_v10  ;;  %325 = vrot.lane.b32.xlu1 %v320_v12, %s1140_s20  ;;  %323 = vrot.lane.b32.xlu0 %v319_v13, %s1140_s20  ;;  %339 = vst.msk [vmem:[#allocation2 + $0x1] sm:$0xff] %vm280_vm2, %v334_v11  ;;  %v408_v28 = vpop.permute.xlu1 %407 }
  0xf5   : > { %v428_v33 = vpop.permute.xlu0 %427 }
  0xf6   : > { %v430_v32 = vpop.permute.xlu1 %429 }
  0xf9   : > { %v342_v16 = vld [vmem:[#allocation2 + $0x9] sm:$0xff]  ;;  %v341_v18 = vld [vmem:[#allocation2 + $0x1] sm:$0xff] }
  0xfa   : > { %354 = vst.msk [vmem:[#allocation2 + $0x9] sm:$0xff] %vm280_vm2, %v350_v14  ;;  %353 = vst.msk [vmem:[#allocation2 + $0x1] sm:$0xff] %vm280_vm2, %v348_v15 }
 0x101   : > { %v356_v22 = vld [vmem:[#allocation2 + $0x9] sm:$0xff]  ;;  %v355_v23 = vld [vmem:[#allocation2 + $0x1] sm:$0xff] }
 0x102   : > { %361 = vrot.lane.b32.xlu1 %v356_v22, %s1139_s25  ;;  %376 = vst.msk [vmem:[#allocation2 + $0x9] sm:$0xff] %vm280_vm2, %v372_v19  ;;  %359 = vrot.lane.b32.xlu0 %v355_v23, %s1139_s25  ;;  %375 = vst.msk [vmem:[#allocation2 + $0x1] sm:$0xff] %vm280_vm2, %v370_v21 }
 0x109   : > { %v378_v26 = vld [vmem:[#allocation2 + $0x9] sm:$0xff]  ;;  %v377_v27 = vld [vmem:[#allocation2 + $0x1] sm:$0xff] }
 0x10a   : > { %383 = vrot.lane.b32.xlu1 %v378_v26, %s1140_s20  ;;  %398 = vst.msk [vmem:[#allocation2 + $0x9] sm:$0xff] %vm280_vm2, %v394_v24  ;;  %381 = vrot.lane.b32.xlu0 %v377_v27, %s1140_s20  ;;  %397 = vst.msk [vmem:[#allocation2 + $0x1] sm:$0xff] %vm280_vm2, %v392_v25 }
 0x111   : > { %v399_v30 = vld [vmem:[#allocation2 + $0x2] sm:$0xff]  ;;  %v400_v31 = vld [vmem:[#allocation2 + $0xa] sm:$0xff] }
 0x112   : > { %412 = vst.msk [vmem:[#allocation2 + $0x9] sm:$0xff] %vm280_vm2, %v408_v28  ;;  %411 = vst.msk [vmem:[#allocation2 + $0x1] sm:$0xff] %vm280_vm2, %v406_v29 }
 0x119   : > { %v414_v34 = vld [vmem:[#allocation2 + $0xa] sm:$0xff]  ;;  %v413_v35 = vld [vmem:[#allocation2 + $0x2] sm:$0xff] }
 0x11a   : > { %419 = vrot.lane.b32.xlu1 %v414_v34, %s1139_s25  ;;  %417 = vrot.lane.b32.xlu0 %v413_v35, %s1139_s25  ;;  %433 = vst.msk [vmem:[#allocation2 + $0x1] sm:$0xff] %vm280_vm2, %v428_v33  ;;  %434 = vst.msk [vmem:[#allocation2 + $0x9] sm:$0xff] %vm280_vm2, %v430_v32 }
 0x121   : > { %v436_v36 = vld [vmem:[#allocation2 + $0xa] sm:$0xff]  ;;  %v435_v37 = vld [vmem:[#allocation2 + $0x2] sm:$0xff] }
 0x122   : > { %441 = vrot.lane.b32.xlu1 %v436_v36, %s1140_s20  ;;  %439 = vrot.lane.b32.xlu0 %v435_v37, %s1140_s20 }
 0x15c   : > { %v304_v38 = vpop.permute.xlu1 %303  ;;  %v302_v39 = vpop.permute.xlu0 %301 }
 0x15d   : > { %v308_v42 = vadd.f32 %v304_v38, %v1456_v4  ;;  %v307_v43 = vadd.f32 %v302_v39, %v1458_v5 }
 0x164   : > { %v326_v40 = vpop.permute.xlu1 %325  ;;  %v324_v41 = vpop.permute.xlu0 %323 }
 0x165   : > { %v330_v44 = vadd.f32 %v326_v40, %v308_v42  ;;  %v329_v45 = vadd.f32 %v324_v41, %v307_v43 }
 0x167   : > { %v344_v48 = vadd.f32 %v342_v16, %v330_v44  ;;  %v343_v49 = vadd.f32 %v341_v18, %v329_v45 }
 0x174   : > { %v362_v46 = vpop.permute.xlu1 %361  ;;  %v360_v47 = vpop.permute.xlu0 %359 }
 0x175   : > { %v366_v52 = vadd.f32 %v362_v46, %v344_v48  ;;  %v365_v53 = vadd.f32 %v360_v47, %v343_v49 }
 0x17c   : > { %v384_v50 = vpop.permute.xlu1 %383  ;;  %v382_v51 = vpop.permute.xlu0 %381 }
 0x17d   : > { %v388_v54 = vadd.f32 %v384_v50, %v366_v52  ;;  %v387_v55 = vadd.f32 %v382_v51, %v365_v53 }
 0x17f   : > { %v402_v58 = vadd.f32 %v400_v31, %v388_v54  ;;  %v401_v59 = vadd.f32 %v399_v30, %v387_v55 }
 0x18c   : > { %v420_v56 = vpop.permute.xlu1 %419  ;;  %v418_v57 = vpop.permute.xlu0 %417 }
 0x18d   : > { %v424_v60 = vadd.f32 %v420_v56, %v402_v58  ;;  %v423_v61 = vadd.f32 %v418_v57, %v401_v59 }
 0x194   : > { %v442_v62 = vpop.permute.xlu1 %441  ;;  %v440_v63 = vpop.permute.xlu0 %439 }
 0x195   : > { %v446_v20 = vadd.f32 %v442_v62, %v424_v60  ;;  %v445_v17 = vadd.f32 %v440_v63, %v423_v61 }
 0x197   : > { %v635_v0 = vmul.f32 -1.442695, %v446_v20  ;;  %v634_v1 = vmul.f32 -1.442695, %v445_v17 }
 0x199   : > { %860 = vpow2.f32 %v635_v0 }
 0x19a   : > { %862 = vpow2.f32 %v634_v1 }
 0x1a6   : > { %v861_v2 = vpop.eup %860 }
 0x1a7   : > { %v863_v3 = vpop.eup %862  ;;  %v454_v4 = vadd.f32 1.0, %v861_v2 }
 0x1a8   : > { %v453_v5 = vadd.f32 1.0, %v863_v3 }
 0x1a9   : > { %864 = vrcp.f32 %v454_v4 }
 0x1aa   : > { %866 = vrcp.f32 %v453_v5 }
 0x1b6   : > { %v865_v6 = vpop.eup %864 }
 0x1b7   : > { %v867_v7 = vpop.eup %866  ;;  %461 = vst.msk [vmem:[%s1294_s29 + $0x8] sm:$0xff] %vm459_vm3, %v865_v6 }
 0x1b8   : > { %460 = vst.msk [vmem:[%s1294_s29] sm:$0xff] %vm459_vm3, %v867_v7 }
 0x1b9   : > { %924 = shalt.err (!%p921_p4)
}
 0x1ba   : > { %s925_s29 = scalar_lea.hbm %s1495_s5, 256  ;;  %s929_s27 = scalar_lea.hbm %s1544_s2, 512 }
 0x1bb   : > { %p926_p11 = scmp.ne.s32.totalorder %s1495_s5, %s925_s29  ;;  %p930_p13 = scmp.lt.s32.totalorder %s1495_s5, %s1544_s2 }
 0x1bc   : > { %p931_p3 = scmp.lt.s32.totalorder %s929_s27, %s925_s29 }
 0x1bd   : > { %p927_p5 = pnand %p926_p11, %p1584_p2 }
 0x1be   : > { %p932_p12 = por %p931_p3, %p930_p13 }
 0x1bf   : > { %p928_p6 = pneg %p927_p5 }
 0x1c1   : > { %p933_p0 = pnand %p932_p12, %p928_p6 }
 0x1c3   : > { %936 = shalt.err (!%p933_p0)
}
 0x1c4   : > { %s1142_s0 = smov 128   ;;  %s1143_s16 = smov 8  }
 0x1c5   : > { %649 = dma.vmem_to_hbm [thread:$0]  (%p1584_p2), %s1497_s30, 256, %s1495_s5, %s463_s6, %s1142_s0, %s1142_s0, %s1143_s16  }
 0x1c6 PF: > { %s491_s25 = sand.u32 1, %s1043_s9   ;;  %p1585_p7 = scmp.ne.s32.totalorder %s1553_s22, 0 }
 0x1c7   : > { %p1586_p8 = scmp.ge.s32.totalorder %s1055_s12, 2  ;;  %s492_s20 = scalar_lea.sflag [#allocation5], %s491_s25 }
 0x1c9   : > { %p660_p9 = pnand %p1586_p8, %p1585_p7 }
 0x1cb   : > { %p661_p10 = pneg %p660_p9 }
 0x1cd   : > { %1038 = dma.done.wait (%p661_p10), %s492_s20, 256  }
 0x1ce   : > { %1040 = vsyncadd (%p661_p10), %s492_s20, 4294967040  ;;  %p16_p1 = scmp.ge.s32.totalorder %s1184_s15, 4   ;;  %s1587_s9 = smov %s1047_s10 }
 0x1cf   : > { %s1588_s10 = smov %s1051_s11  ;;  %s1589_s11 = smov %s1196_s18 }
 0x1d0   : > { %s1590_s12 = smov %s1184_s15  ;;  %18 = sbr.rel (!%p16_p1) target bundleno = 8 (0x8), region = 97 }
 0x1d5   :  { %497 = vsyncpa [#allocation4], 1 }
 0x1d6   :  { %499 = vsyncpa [#allocation4 + $0x1], 1 }
 0x1d7   :  { %500 = vsyncpa [#allocation5], 1 }
 0x1d8   :  { %502 = vsyncpa [#allocation5 + $0x1], 1 }
 0x1d9   :  { %503 = vsyncpa [#allocation6], 1 }
 0x1da   :  { %505 = vsyncpa [#allocation6 + $0x1], 1 }

</bundles_post_ra>
